<compile_context>
chip_gen: v7x
topology: tpu7x:2x2x1
jax: 0.10.0
libtpu: 0.0.40
codegen_flags: <defaults>
</compile_context>

<pallas_src>
import functools

import jax
import jax.numpy as jnp
from jax.experimental import pallas as pl
from jax.experimental.pallas import tpu as pltpu


# ----------------------------------------------------------------------------
# Fused kernel: Conv3x3(+bias, ReLU) -> Conv1x1(+bias) for one (batch, row-tile)
# ----------------------------------------------------------------------------
def _seg_head_kernel(xp_ref, w1_ref, b1_ref, w2_ref, b2_ref, o_ref, *, th, W, cin):
    r = pl.program_id(1)
    row0 = pl.multiple_of(r * th, th)

    # Halo window of the zero-padded bf16 input: (th+2, W+2, cin).
    xwin = xp_ref[0, pl.ds(row0, th + 2), :, :]

    hid = w1_ref.shape[-1]
    # 3x3 conv as 9 shifted bf16 MXU matmuls accumulated in f32.
    # (in-VMEM "im2col": the patch matrix never touches HBM)
    acc = jnp.zeros((th * W, hid), jnp.float32)
    for di in range(3):
        for dj in range(3):
            tap = xwin[di:di + th, dj:dj + W, :].reshape(th * W, cin)
            acc = acc + jnp.dot(tap, w1_ref[di * 3 + dj],
                                preferred_element_type=jnp.float32)

    # f32 epilogue: bias + ReLU (kept in f32 -- v5e has no bf16 VPU).
    hidden = jnp.maximum(acc + b1_ref[...], 0.0)

    # 1x1 conv: bf16 MXU matmul with f32 accumulation, then bias; dense f32 store.
    out = jnp.dot(hidden.astype(jnp.bfloat16), w2_ref[...],
                  preferred_element_type=jnp.float32) + b2_ref[...]
    o_ref[0] = out.astype(o_ref.dtype)


def _pick_row_tile(H, W):
    """Largest divisor of H giving >=2 row tiles and ~<=256 matmul rows per tile."""
    target = max(1, 256 // max(W, 1))
    for th in range(min(H - 1, target), 0, -1):
        if H % th == 0:
            return th
    return H


# ----------------------------------------------------------------------------
# Wrapper: NCHW boundary, padding / layout prep, pallas_call
# ----------------------------------------------------------------------------
def segmentation_head_forward(x_nchw, params):
    """x_nchw: (N, Cin, H, W) f32 -> (N, Cout, H, W) f32."""
    w1, b1, w2, b2 = params["w1"], params["b1"], params["w2"], params["b2"]
    N, cin, H, W = x_nchw.shape
    kh, kw, _, hid = w1.shape            # (3, 3, cin, 128) HWIO
    cout = w2.shape[1]

    cin_p = ((cin + 7) // 8) * 8          # sublane-friendly contraction dim
    cout_p = ((cout + 127) // 128) * 128  # lane-dense output store
    th = _pick_row_tile(H, W)

    # NCHW -> NHWC, bf16 for the MXU; zero-pad spatial halo (pad=1) + channels.
    x = jnp.transpose(x_nchw, (0, 2, 3, 1)).astype(jnp.bfloat16)
    xp = jnp.pad(x, ((0, 0), (1, 1), (1, 1), (0, cin_p - cin)))

    w1_p = jnp.pad(w1, ((0, 0), (0, 0), (0, cin_p - cin), (0, 0)))
    w1_p = w1_p.reshape(kh * kw, cin_p, hid).astype(jnp.bfloat16)
    w2_p = jnp.pad(w2, ((0, 0), (0, cout_p - cout))).astype(jnp.bfloat16)
    b1_p = b1.reshape(1, hid).astype(jnp.float32)
    b2_p = jnp.pad(b2, (0, cout_p - cout)).reshape(1, cout_p).astype(jnp.float32)

    grid = (N, H // th)
    kernel = functools.partial(_seg_head_kernel, th=th, W=W, cin=cin_p)
    out = pl.pallas_call(
        kernel,
        out_shape=jax.ShapeDtypeStruct((N, H * W, cout_p), jnp.float32),
        grid=grid,
        in_specs=[
            # Full padded image per batch element; the index_map ignores the
            # row-tile axis so the block is DMA'd once per batch element.
            # TODO(synk): for large H/W, switch to halo row tiles so the whole
            # padded image need not be resident in VMEM.
            pl.BlockSpec((1, H + 2, W + 2, cin_p), lambda n, r: (n, 0, 0, 0)),
            pl.BlockSpec((kh * kw, cin_p, hid), lambda n, r: (0, 0, 0)),  # 3x3 weights
            pl.BlockSpec((1, hid), lambda n, r: (0, 0)),                  # bias1
            pl.BlockSpec((hid, cout_p), lambda n, r: (0, 0)),             # 1x1 weights
            pl.BlockSpec((1, cout_p), lambda n, r: (0, 0)),               # bias2
        ],
        out_specs=pl.BlockSpec((1, th * W, cout_p), lambda n, r: (n, r, 0)),
        compiler_params=pltpu.CompilerParams(
            dimension_semantics=("parallel", "parallel"),
        ),
    )(xp, w1_p, b1_p, w2_p, b2_p)

    out = out.reshape(N, H, W, cout_p)[..., :cout]   # drop lane padding
    return jnp.transpose(out, (0, 3, 1, 2))          # NHWC -> NCHW


# ----------------------------------------------------------------------------
# Deterministic synthetic parameters + pure-JAX reference (same bf16 numerics)
# ----------------------------------------------------------------------------
def init_params(key, in_channels, out_channels, hidden=128):
    k1, k2, k3, k4 = jax.random.split(key, 4)
    w1 = (jax.random.normal(k1, (3, 3, in_channels, hidden), jnp.float32)
          / jnp.sqrt(3 * 3 * in_channels))
    b1 = 0.1 * jax.random.normal(k2, (hidden,), jnp.float32)
    w2 = (jax.random.normal(k3, (hidden, out_channels), jnp.float32)
          / jnp.sqrt(hidden))
    b2 = 0.1 * jax.random.normal(k4, (out_channels,), jnp.float32)
    return {"w1": w1, "b1": b1, "w2": w2, "b2": b2}


def _reference(x_nchw, params):
    """Pure-JAX reference mirroring the kernel's bf16-in / f32-accumulate math."""
    x = jnp.transpose(x_nchw, (0, 2, 3, 1)).astype(jnp.bfloat16)
    h = jax.lax.conv_general_dilated(
        x, params["w1"].astype(jnp.bfloat16),
        window_strides=(1, 1), padding=((1, 1), (1, 1)),
        dimension_numbers=("NHWC", "HWIO", "NHWC"),
        preferred_element_type=jnp.float32)
    h = jnp.maximum(h + params["b1"], 0.0).astype(jnp.bfloat16)
    o = jnp.dot(h, params["w2"].astype(jnp.bfloat16),
                preferred_element_type=jnp.float32) + params["b2"]
    return jnp.transpose(o, (0, 3, 1, 2))


if __name__ == "__main__":
    key = jax.random.PRNGKey(0)
    pkey, xkey = jax.random.split(key)
    in_channels, out_channels = 4, 8
    N, H, W = 2, 16, 16

    params = init_params(pkey, in_channels, out_channels)
    x = jax.random.normal(xkey, (N, in_channels, H, W), dtype=jnp.float32)

    fwd = jax.jit(segmentation_head_forward)
    out = fwd(x, params)
    jax.block_until_ready(out)

    assert out.shape == (N, out_channels, H, W), out.shape
    assert out.dtype == jnp.float32

    ref = _reference(x, params)
    err = float(jnp.max(jnp.abs(out - ref)))
    assert err < 1e-2, f"max abs err vs reference: {err}"
    print("KERNEL_OK")
</pallas_src>

<mosaic_0001>
module attributes {stable_mosaic.version = 11 : i64} {
  func.func @_seg_head_kernel(%arg0: i32, %arg1: i32, %arg2: memref<1x18x18x8xbf16, #tpu.memory_space<vmem>>, %arg3: memref<9x8x128xbf16, #tpu.memory_space<vmem>>, %arg4: memref<1x128xf32, #tpu.memory_space<vmem>>, %arg5: memref<128x128xbf16, #tpu.memory_space<vmem>>, %arg6: memref<1x128xf32, #tpu.memory_space<vmem>>, %arg7: memref<1x128x128xf32, #tpu.memory_space<vmem>>) attributes {dimension_semantics = [#tpu.dimension_semantics<parallel>, #tpu.dimension_semantics<parallel>], iteration_bounds = array<i64: 2, 2>, scalar_prefetch = 0 : i64, scratch_operands = 0 : i64, tpu.core_type = #tpu.core_type<tc>, window_params = [{transform_indices = @transform_0, window_bounds = array<i64: 1, 18, 18, 8>}, {pipeline_mode = #tpu.pipeline_mode<synchronous>, transform_indices = @transform_1, window_bounds = array<i64: 9, 8, 128>}, {pipeline_mode = #tpu.pipeline_mode<synchronous>, transform_indices = @transform_2, window_bounds = array<i64: 1, 128>}, {pipeline_mode = #tpu.pipeline_mode<synchronous>, transform_indices = @transform_3, window_bounds = array<i64: 128, 128>}, {pipeline_mode = #tpu.pipeline_mode<synchronous>, transform_indices = @transform_4, window_bounds = array<i64: 1, 128>}, {transform_indices = @transform_5, window_bounds = array<i64: 1, 128, 128>}]} {
    %c8_i32 = arith.constant 8 : i32
    %0 = arith.muli %arg1, %c8_i32 : i32
    %1 = tpu.assume_multiple %0, 8 : i32
    %c0 = arith.constant 0 : index
    %2 = arith.index_cast %1 : i32 to index
    %c0_0 = arith.constant 0 : index
    %c0_1 = arith.constant 0 : index
    %3 = vector.load %arg2[%c0, %2, %c0_0, %c0_1] : memref<1x18x18x8xbf16, #tpu.memory_space<vmem>>, vector<1x10x18x8xbf16>
    %4 = vector.shape_cast %3 : vector<1x10x18x8xbf16> to vector<10x18x8xbf16>
    %cst = arith.constant 0.000000e+00 : f32
    %5 = vector.broadcast %cst : f32 to vector<128x128xf32>
    %6 = vector.extract_strided_slice %4 {offsets = [0, 0, 0], sizes = [8, 16, 8], strides = [1, 1, 1]} : vector<10x18x8xbf16> to vector<8x16x8xbf16>
    %7 = vector.shape_cast %6 : vector<8x16x8xbf16> to vector<128x8xbf16>
    %c0_2 = arith.constant 0 : index
    %c0_3 = arith.constant 0 : index
    %c0_4 = arith.constant 0 : index
    %8 = vector.load %arg3[%c0_2, %c0_3, %c0_4] : memref<9x8x128xbf16, #tpu.memory_space<vmem>>, vector<1x8x128xbf16>
    %9 = vector.shape_cast %8 : vector<1x8x128xbf16> to vector<8x128xbf16>
    %cst_5 = arith.constant dense<0.000000e+00> : vector<128x128xf32>
    %10 = tpu.matmul %7, %9, %cst_5 {dimension_numbers = #tpu.dot_dimension_numbers<[1], [0], [0], [1], [0, 0, 1, 1], [], []>} : vector<128x8xbf16>, vector<8x128xbf16>, vector<128x128xf32> -> vector<128x128xf32>
    %11 = arith.addf %5, %10 : vector<128x128xf32>
    %12 = vector.extract_strided_slice %4 {offsets = [0, 1, 0], sizes = [8, 16, 8], strides = [1, 1, 1]} : vector<10x18x8xbf16> to vector<8x16x8xbf16>
    %13 = vector.shape_cast %12 : vector<8x16x8xbf16> to vector<128x8xbf16>
    %c1 = arith.constant 1 : index
    %c0_6 = arith.constant 0 : index
    %c0_7 = arith.constant 0 : index
    %14 = vector.load %arg3[%c1, %c0_6, %c0_7] : memref<9x8x128xbf16, #tpu.memory_space<vmem>>, vector<1x8x128xbf16>
    %15 = vector.shape_cast %14 : vector<1x8x128xbf16> to vector<8x128xbf16>
    %cst_8 = arith.constant dense<0.000000e+00> : vector<128x128xf32>
    %16 = tpu.matmul %13, %15, %cst_8 {dimension_numbers = #tpu.dot_dimension_numbers<[1], [0], [0], [1], [0, 0, 1, 1], [], []>} : vector<128x8xbf16>, vector<8x128xbf16>, vector<128x128xf32> -> vector<128x128xf32>
    %17 = arith.addf %11, %16 : vector<128x128xf32>
    %18 = vector.extract_strided_slice %4 {offsets = [0, 2, 0], sizes = [8, 16, 8], strides = [1, 1, 1]} : vector<10x18x8xbf16> to vector<8x16x8xbf16>
    %19 = vector.shape_cast %18 : vector<8x16x8xbf16> to vector<128x8xbf16>
    %c2 = arith.constant 2 : index
    %c0_9 = arith.constant 0 : index
    %c0_10 = arith.constant 0 : index
    %20 = vector.load %arg3[%c2, %c0_9, %c0_10] : memref<9x8x128xbf16, #tpu.memory_space<vmem>>, vector<1x8x128xbf16>
    %21 = vector.shape_cast %20 : vector<1x8x128xbf16> to vector<8x128xbf16>
    %cst_11 = arith.constant dense<0.000000e+00> : vector<128x128xf32>
    %22 = tpu.matmul %19, %21, %cst_11 {dimension_numbers = #tpu.dot_dimension_numbers<[1], [0], [0], [1], [0, 0, 1, 1], [], []>} : vector<128x8xbf16>, vector<8x128xbf16>, vector<128x128xf32> -> vector<128x128xf32>
    %23 = arith.addf %17, %22 : vector<128x128xf32>
    %24 = vector.extract_strided_slice %4 {offsets = [1, 0, 0], sizes = [8, 16, 8], strides = [1, 1, 1]} : vector<10x18x8xbf16> to vector<8x16x8xbf16>
    %25 = vector.shape_cast %24 : vector<8x16x8xbf16> to vector<128x8xbf16>
    %c3 = arith.constant 3 : index
    %c0_12 = arith.constant 0 : index
    %c0_13 = arith.constant 0 : index
    %26 = vector.load %arg3[%c3, %c0_12, %c0_13] : memref<9x8x128xbf16, #tpu.memory_space<vmem>>, vector<1x8x128xbf16>
    %27 = vector.shape_cast %26 : vector<1x8x128xbf16> to vector<8x128xbf16>
    %cst_14 = arith.constant dense<0.000000e+00> : vector<128x128xf32>
    %28 = tpu.matmul %25, %27, %cst_14 {dimension_numbers = #tpu.dot_dimension_numbers<[1], [0], [0], [1], [0, 0, 1, 1], [], []>} : vector<128x8xbf16>, vector<8x128xbf16>, vector<128x128xf32> -> vector<128x128xf32>
    %29 = arith.addf %23, %28 : vector<128x128xf32>
    %30 = vector.extract_strided_slice %4 {offsets = [1, 1, 0], sizes = [8, 16, 8], strides = [1, 1, 1]} : vector<10x18x8xbf16> to vector<8x16x8xbf16>
    %31 = vector.shape_cast %30 : vector<8x16x8xbf16> to vector<128x8xbf16>
    %c4 = arith.constant 4 : index
    %c0_15 = arith.constant 0 : index
    %c0_16 = arith.constant 0 : index
    %32 = vector.load %arg3[%c4, %c0_15, %c0_16] : memref<9x8x128xbf16, #tpu.memory_space<vmem>>, vector<1x8x128xbf16>
    %33 = vector.shape_cast %32 : vector<1x8x128xbf16> to vector<8x128xbf16>
    %cst_17 = arith.constant dense<0.000000e+00> : vector<128x128xf32>
    %34 = tpu.matmul %31, %33, %cst_17 {dimension_numbers = #tpu.dot_dimension_numbers<[1], [0], [0], [1], [0, 0, 1, 1], [], []>} : vector<128x8xbf16>, vector<8x128xbf16>, vector<128x128xf32> -> vector<128x128xf32>
    %35 = arith.addf %29, %34 : vector<128x128xf32>
    %36 = vector.extract_strided_slice %4 {offsets = [1, 2, 0], sizes = [8, 16, 8], strides = [1, 1, 1]} : vector<10x18x8xbf16> to vector<8x16x8xbf16>
    %37 = vector.shape_cast %36 : vector<8x16x8xbf16> to vector<128x8xbf16>
    %c5 = arith.constant 5 : index
    %c0_18 = arith.constant 0 : index
    %c0_19 = arith.constant 0 : index
    %38 = vector.load %arg3[%c5, %c0_18, %c0_19] : memref<9x8x128xbf16, #tpu.memory_space<vmem>>, vector<1x8x128xbf16>
    %39 = vector.shape_cast %38 : vector<1x8x128xbf16> to vector<8x128xbf16>
    %cst_20 = arith.constant dense<0.000000e+00> : vector<128x128xf32>
    %40 = tpu.matmul %37, %39, %cst_20 {dimension_numbers = #tpu.dot_dimension_numbers<[1], [0], [0], [1], [0, 0, 1, 1], [], []>} : vector<128x8xbf16>, vector<8x128xbf16>, vector<128x128xf32> -> vector<128x128xf32>
    %41 = arith.addf %35, %40 : vector<128x128xf32>
    %42 = vector.extract_strided_slice %4 {offsets = [2, 0, 0], sizes = [8, 16, 8], strides = [1, 1, 1]} : vector<10x18x8xbf16> to vector<8x16x8xbf16>
    %43 = vector.shape_cast %42 : vector<8x16x8xbf16> to vector<128x8xbf16>
    %c6 = arith.constant 6 : index
    %c0_21 = arith.constant 0 : index
    %c0_22 = arith.constant 0 : index
    %44 = vector.load %arg3[%c6, %c0_21, %c0_22] : memref<9x8x128xbf16, #tpu.memory_space<vmem>>, vector<1x8x128xbf16>
    %45 = vector.shape_cast %44 : vector<1x8x128xbf16> to vector<8x128xbf16>
    %cst_23 = arith.constant dense<0.000000e+00> : vector<128x128xf32>
    %46 = tpu.matmul %43, %45, %cst_23 {dimension_numbers = #tpu.dot_dimension_numbers<[1], [0], [0], [1], [0, 0, 1, 1], [], []>} : vector<128x8xbf16>, vector<8x128xbf16>, vector<128x128xf32> -> vector<128x128xf32>
    %47 = arith.addf %41, %46 : vector<128x128xf32>
    %48 = vector.extract_strided_slice %4 {offsets = [2, 1, 0], sizes = [8, 16, 8], strides = [1, 1, 1]} : vector<10x18x8xbf16> to vector<8x16x8xbf16>
    %49 = vector.shape_cast %48 : vector<8x16x8xbf16> to vector<128x8xbf16>
    %c7 = arith.constant 7 : index
    %c0_24 = arith.constant 0 : index
    %c0_25 = arith.constant 0 : index
    %50 = vector.load %arg3[%c7, %c0_24, %c0_25] : memref<9x8x128xbf16, #tpu.memory_space<vmem>>, vector<1x8x128xbf16>
    %51 = vector.shape_cast %50 : vector<1x8x128xbf16> to vector<8x128xbf16>
    %cst_26 = arith.constant dense<0.000000e+00> : vector<128x128xf32>
    %52 = tpu.matmul %49, %51, %cst_26 {dimension_numbers = #tpu.dot_dimension_numbers<[1], [0], [0], [1], [0, 0, 1, 1], [], []>} : vector<128x8xbf16>, vector<8x128xbf16>, vector<128x128xf32> -> vector<128x128xf32>
    %53 = arith.addf %47, %52 : vector<128x128xf32>
    %54 = vector.extract_strided_slice %4 {offsets = [2, 2, 0], sizes = [8, 16, 8], strides = [1, 1, 1]} : vector<10x18x8xbf16> to vector<8x16x8xbf16>
    %55 = vector.shape_cast %54 : vector<8x16x8xbf16> to vector<128x8xbf16>
    %c8 = arith.constant 8 : index
    %c0_27 = arith.constant 0 : index
    %c0_28 = arith.constant 0 : index
    %56 = vector.load %arg3[%c8, %c0_27, %c0_28] : memref<9x8x128xbf16, #tpu.memory_space<vmem>>, vector<1x8x128xbf16>
    %57 = vector.shape_cast %56 : vector<1x8x128xbf16> to vector<8x128xbf16>
    %cst_29 = arith.constant dense<0.000000e+00> : vector<128x128xf32>
    %58 = tpu.matmul %55, %57, %cst_29 {dimension_numbers = #tpu.dot_dimension_numbers<[1], [0], [0], [1], [0, 0, 1, 1], [], []>} : vector<128x8xbf16>, vector<8x128xbf16>, vector<128x128xf32> -> vector<128x128xf32>
    %59 = arith.addf %53, %58 : vector<128x128xf32>
    %c0_30 = arith.constant 0 : index
    %c0_31 = arith.constant 0 : index
    %60 = vector.load %arg4[%c0_30, %c0_31] : memref<1x128xf32, #tpu.memory_space<vmem>>, vector<1x128xf32>
    %61 = vector.broadcast %60 : vector<1x128xf32> to vector<128x128xf32>
    %62 = arith.addf %59, %61 : vector<128x128xf32>
    %cst_32 = arith.constant 0.000000e+00 : f32
    %63 = vector.broadcast %cst_32 : f32 to vector<128x128xf32>
    %64 = arith.maximumf %62, %63 : vector<128x128xf32>
    %65 = arith.truncf %64 : vector<128x128xf32> to vector<128x128xbf16>
    %c0_33 = arith.constant 0 : index
    %c0_34 = arith.constant 0 : index
    %66 = vector.load %arg5[%c0_33, %c0_34] : memref<128x128xbf16, #tpu.memory_space<vmem>>, vector<128x128xbf16>
    %cst_35 = arith.constant dense<0.000000e+00> : vector<128x128xf32>
    %67 = tpu.matmul %65, %66, %cst_35 {dimension_numbers = #tpu.dot_dimension_numbers<[1], [0], [0], [1], [0, 0, 1, 1], [], []>} : vector<128x128xbf16>, vector<128x128xbf16>, vector<128x128xf32> -> vector<128x128xf32>
    %c0_36 = arith.constant 0 : index
    %c0_37 = arith.constant 0 : index
    %68 = vector.load %arg6[%c0_36, %c0_37] : memref<1x128xf32, #tpu.memory_space<vmem>>, vector<1x128xf32>
    %69 = vector.broadcast %68 : vector<1x128xf32> to vector<128x128xf32>
    %70 = arith.addf %67, %69 : vector<128x128xf32>
    %c0_38 = arith.constant 0 : index
    %c0_39 = arith.constant 0 : index
    %c0_40 = arith.constant 0 : index
    %71 = vector.load %arg7[%c0_38, %c0_39, %c0_40] : memref<1x128x128xf32, #tpu.memory_space<vmem>>, vector<1x128x128xf32>
    %72 = vector.shape_cast %71 : vector<1x128x128xf32> to vector<128x128xf32>
    %73 = vector.shape_cast %70 : vector<128x128xf32> to vector<1x128x128xf32>
    tpu.vector_store %arg7[%c0_38, %c0_39, %c0_40], %73 {strides = array<i32>} : memref<1x128x128xf32, #tpu.memory_space<vmem>>, vector<1x128x128xf32>,
    return
  }
  func.func @transform_0(%arg0: i32, %arg1: i32) -> (i32, i32, i32, i32) {
    %c0_i32 = arith.constant 0 : i32
    %c0_i32_0 = arith.constant 0 : i32
    %c0_i32_1 = arith.constant 0 : i32
    %c0_i32_2 = arith.constant 0 : i32
    return %arg0, %c0_i32, %c0_i32_0, %c0_i32_1 : i32, i32, i32, i32
  }
  func.func @transform_1(%arg0: i32, %arg1: i32) -> (i32, i32, i32) {
    %c0_i32 = arith.constant 0 : i32
    %c0_i32_0 = arith.constant 0 : i32
    %c0_i32_1 = arith.constant 0 : i32
    %c0_i32_2 = arith.constant 0 : i32
    return %c0_i32, %c0_i32_0, %c0_i32_1 : i32, i32, i32
  }
  func.func @transform_2(%arg0: i32, %arg1: i32) -> (i32, i32) {
    %c0_i32 = arith.constant 0 : i32
    %c0_i32_0 = arith.constant 0 : i32
    %c0_i32_1 = arith.constant 0 : i32
    return %c0_i32, %c0_i32_0 : i32, i32
  }
  func.func @transform_3(%arg0: i32, %arg1: i32) -> (i32, i32) {
    %c0_i32 = arith.constant 0 : i32
    %c0_i32_0 = arith.constant 0 : i32
    %c0_i32_1 = arith.constant 0 : i32
    return %c0_i32, %c0_i32_0 : i32, i32
  }
  func.func @transform_4(%arg0: i32, %arg1: i32) -> (i32, i32) {
    %c0_i32 = arith.constant 0 : i32
    %c0_i32_0 = arith.constant 0 : i32
    %c0_i32_1 = arith.constant 0 : i32
    return %c0_i32, %c0_i32_0 : i32, i32
  }
  func.func @transform_5(%arg0: i32, %arg1: i32) -> (i32, i32, i32) {
    %c0_i32 = arith.constant 0 : i32
    %c0_i32_0 = arith.constant 0 : i32
    return %arg0, %arg1, %c0_i32 : i32, i32, i32
  }
}

</mosaic_0001>

<bundles_post_ra>
// kernel: segmentation_head_forward.1
= control target key start
LH: loop header
LB: loop body
LE: loop exit
PB: predicated region body
PF: predicated region fallthrough
CT: control target
= control target key end

     0   :  { %s2859_s18 = smov 0   ;;  %s2861_s19 = smov 0   ;;  %s3504_s0 = inlined_call_operand.vmem [shape: bf16[2,18,18,8], index: 0, kind: input, shape index: {}]   ;;  %s3505_s1 = inlined_call_operand.vmem [shape: bf16[9,8,128], index: 1, kind: input, shape index: {}]   ;;  %s3506_s2 = inlined_call_operand.vmem [shape: f32[1,128], index: 2, kind: input, shape index: {}]   ;;  %s3507_s3 = inlined_call_operand.vmem [shape: bf16[128,128], index: 3, kind: input, shape index: {}]   ;;  %s3508_s4 = inlined_call_operand.vmem [shape: f32[1,128], index: 4, kind: input, shape index: {}]   ;;  %s3509_s5 = inlined_call_operand.vmem [shape: f32[2,256,128], index: 5, kind: output, shape index: {}]  }
   0x1   :  { %s2863_s20 = smov 0   ;;  %s2865_s21 = smov 0  }
   0x2   :  { %s2867_s22 = smov 0  }
   0x3 LB: > { %s24_s23 = sadd.s32 1, %s2819_s20  ;;  %s27_s24 = sadd.s32 1, %s2823_s21  ;;  %s2827_s22 = sphi %s2867_s22, %s15_s22   ;;  %s2823_s21 = sphi %s2865_s21, %s3517_s21   ;;  %s2819_s20 = sphi %s2863_s20, %s3516_s20   ;;  %s2815_s19 = sphi %s2861_s19, %s3515_s19   ;;  %s2811_s18 = sphi %s2859_s18, %s3514_s18  }
   0x4   : > { %p25_p0 = scmp.ge.s32.totalorder %s24_s23, 2  ;;  %p2161_p1 = scmp.ge.s32.totalorder %s2827_s22, 1 }
   0x5   : > { %p201_p2 = scmp.lt.s32.totalorder %s2827_s22, 5 }
   0x6   : > { %s3519_s23 = smov (%p25_p0, %s24_s23), 0  ;;  %s3521_s24 = smov (!%p25_p0, %s27_s24), %s2823_s21 }
   0x7   : > { %p202_p3 = pnand %p2161_p1, %p201_p2  ;;  %p29_p4 = scmp.ge.s32.totalorder %s3521_s24, 2 }
   0x8   : > { %vm530_vm0 = vcmask (!%p202_p3), 1043456   ;;  %v2237_v0 = vld [vmem:[%s3505_s1 + $0x10] sm:$0xf] (!%p202_p3)  ;;  %v2169_v1 = vld [vmem:[%s3505_s1 + $0x4] sm:$0xf] (!%p202_p3)  ;;  %p233_p5 = scmp.lt.s32.totalorder (!%p202_p3), %s2815_s19, 1 }
   0x9   : > { %s3523_s24 = smov (%p29_p4, %s3521_s24), 0  ;;  %205 = sbr.rel (%p202_p3) target bundleno = 637 (0x27d), region = 40 }
   0xa   : > { %2725 = vmatprep.subr.msk.bf16.mxu0 (!%p202_p3), %vm530_vm0, %v2237_v0  ;;  %2721 = vmatprep.subr.msk.bf16.mxu1 (!%p202_p3), %vm530_vm0, %v2169_v1  ;;  %v1187_v2 = vsel (!%p202_p3), %vm530_vm0, %v2237_v0, 0  ;;  %v532_v3 = vsel (!%p202_p3), %vm530_vm0, %v2169_v1, 0  ;;  %v2906_v4 = vld [vmem:[%s3505_s1 + $0x14] sm:$0xf] (!%p202_p3)  ;;  %s2301_s6 = smul.u32 (!%p202_p3), 96, %s2811_s18  ;;  %vm505_vm4 = vcmask (!%p202_p3), 64512  }
   0xb   : > { %2472 = vmatpush3.bf16.msra.mxu0 (!%p202_p3), %v1187_v2  ;;  %2400 = vmatpush3.bf16.msra.mxu1 (!%p202_p3), %v532_v3  ;;  %v2914_v5 = vld [vmem:[%s3505_s1] sm:$0xf] (!%p202_p3)  ;;  %vm284_vm1 = vsmask.f32 (!%p202_p3), 3328  ;;  %vm285_vm2 = vsmask.f32 (!%p202_p3), 7440 }
   0xc   : > { %2726 = vmatprep.subr.msk.bf16.mxu0 (!%p202_p3), %vm530_vm0, %v2906_v4  ;;  %2722 = vmatprep.subr.msk.bf16.mxu1 (!%p202_p3), %vm530_vm0, %v2914_v5  ;;  %vm2957_vm3 = vmor (!%p202_p3), %vm284_vm1, %vm285_vm2  ;;  %v1319_v59 = vsel (!%p202_p3), %vm530_vm0, %v2906_v4, 0  ;;  %v696_v61 = vsel (!%p202_p3), %vm530_vm0, %v2914_v5, 0  ;;  %v3003_v5 = vld [vmem:[%s3505_s1 + $0x8] sm:$0xf] (!%p202_p3)  ;;  %vm803_vm5 = vcmask (!%p202_p3), 1042432   ;;  %vm804_vm6 = vcmask (!%p202_p3), 1046532  }
   0xd   : > { %vm3134_vm7 = vmor (!%p202_p3), %vm803_vm5, %vm804_vm6 }
  0x10   : > { %s3525_s19 = smov (!%p233_p5, %s2815_s19), 1 }
  0x11   : > { %s2730_s9 = smul.u32 216, %s3525_s19  ;;  %s2164_s7 = sshll.u32 %s3525_s19, 5 }
  0x13   : > { %s237_s12 = scalar_lea.vmem %s3504_s0, %s2730_s9 }
  0x14   : > { %s2922_s13 = scalar_lea.vmem %s237_s12, %s2301_s6  ;;  %s2163_s6 = sshll.u32 %s2811_s18, 4 }
  0x15   : > { %v2925_v6 = vld [vmem:[%s2922_s13] sm:$0xf]  ;;  %v2928_v7 = vld [vmem:[%s2922_s13 + $0x4] sm:$0xf]  ;;  %v2931_v8 = vld [vmem:[%s2922_s13 + $0x8] sm:$0x1] }
  0x16   : > { %v288_v9 = vshrl.u32 %v2925_v6, 16  ;;  %v291_v10 = vshll.u32 %v2925_v6, 16  ;;  %v297_v11 = vshll.u32 %v2928_v7, 16  ;;  %v301_v12 = vshrl.u32 %v2928_v7, 16  ;;  %v2938_v13 = vld [vmem:[%s2922_s13 + $0xc] sm:$0xf] }
  0x17   : > { %v307_v14 = vshll.u32 %v2931_v8, 16  ;;  %v2942_v15 = vld [vmem:[%s2922_s13 + $0x10] sm:$0xf]  ;;  %v2945_v16 = vld [vmem:[%s2922_s13 + $0x14] sm:$0x1]  ;;  %v312_v22 = vshrl.u32 %v2938_v13, 16 }
  0x18   : > { %v290_v17 = vrot.slane %v288_v9, 4  ;;  %v293_v18 = vrot.slane %v291_v10, 5  ;;  %v299_v19 = vrot.slane %v297_v11, 5  ;;  %v303_v20 = vrot.slane %v301_v12, 4  ;;  %v2953_v29 = vld [vmem:[%s2922_s13 + $0x18] sm:$0xf] }
  0x19   : > { %v309_v21 = vrot.slane %v307_v14, 5  ;;  %v315_v23 = vshll.u32 %v2938_v13, 16  ;;  %v321_v24 = vshll.u32 %v2942_v15, 16  ;;  %v325_v27 = vshrl.u32 %v2942_v15, 16  ;;  %v2962_v34 = vld [vmem:[%s2922_s13 + $0x1c] sm:$0xf] }
  0x1a   : > { %v294_v25 = vor.u32 %v293_v18, %v290_v17  ;;  %v304_v26 = vor.u32 %v303_v20, %v299_v19  ;;  %v331_v28 = vshll.u32 %v2945_v16, 16  ;;  %v314_v31 = vrot.slane %v312_v22, 4  ;;  %v2965_v40 = vld [vmem:[%s2922_s13 + $0x20] sm:$0x1]  ;;  %v2975_v51 = vld [vmem:[%s2922_s13 + $0x24] sm:$0xf] }
  0x1b   : > { %v317_v32 = vrot.slane %v315_v23, 5  ;;  %v323_v33 = vrot.slane %v321_v24, 5  ;;  %v327_v37 = vrot.slane %v325_v27, 4  ;;  %v336_v41 = vshrl.u32 %v2953_v29, 16  ;;  %v2980_v56 = vld [vmem:[%s2922_s13 + $0x28] sm:$0xf] }
  0x1c   : > { %v295_v35 = vrot.slane %v294_v25, 4  ;;  %v305_v36 = vrot.slane %v304_v26, 4  ;;  %v333_v39 = vrot.slane %v331_v28, 5  ;;  %v339_v42 = vshll.u32 %v2953_v29, 16  ;;  %v2988_v60 = vld [vmem:[%s2922_s13 + $0x2c] sm:$0x1] }
  0x1d   : > { %v318_v38 = vor.u32 %v317_v32, %v314_v31  ;;  %v328_v45 = vor.u32 %v327_v37, %v323_v33  ;;  %v345_v46 = vshll.u32 %v2962_v34, 16  ;;  %v338_v49 = vrot.slane %v336_v41, 4  ;;  %v2996_v2 = vld [vmem:[%s2922_s13 + $0x30] sm:$0xf]  ;;  %v3008_v18 = vld [vmem:[%s2922_s13 + $0x34] sm:$0xf] }
  0x1e   : > { %v300_v43 = vsel %vm2957_vm3, %v295_v35, %v299_v19  ;;  %v310_v44 = vsel %vm2957_vm3, %v305_v36, %v309_v21  ;;  %v341_v50 = vrot.slane %v339_v42, 5  ;;  %v349_v54 = vshrl.u32 %v2962_v34, 16  ;;  %v3015_v22 = vld [vmem:[%s2922_s13 + $0x38] sm:$0x1]  ;;  %v3022_v35 = vld [vmem:[%s2922_s13 + $0x3c] sm:$0xf] }
  0x1f   : > { %v2170_v47 = vcombine.low %v300_v43, %v310_v44  ;;  %v319_v48 = vrot.slane %v318_v38, 4  ;;  %v329_v52 = vrot.slane %v328_v45, 4  ;;  %v347_v53 = vrot.slane %v345_v46, 5  ;;  %v3030_v41 = vld [vmem:[%s2922_s13 + $0x40] sm:$0xf]  ;;  %p241_p6 = scmp.lt.s32.totalorder %s2163_s6, 31 }
  0x20   : > { %v355_v55 = vshll.u32 %v2965_v40, 16  ;;  %v342_v58 = vor.u32 %v341_v50, %v338_v49  ;;  %v351_v63 = vrot.slane %v349_v54, 4  ;;  %v360_v1 = vshrl.u32 %v2975_v51, 16  ;;  %v3035_v42 = vld [vmem:[%s3505_s1 + $0x18] sm:$0xf] }
  0x21   : > { %2401 = vmatprep.mubr.msk.bf16.mxu1 %vm505_vm4, %v2170_v47  ;;  %v324_v57 = vsel %vm2957_vm3, %v319_v48, %v323_v33  ;;  %v334_v62 = vsel %vm2957_vm3, %v329_v52, %v333_v39  ;;  %v363_v4 = vshll.u32 %v2975_v51, 16  ;;  %v369_v10 = vshll.u32 %v2980_v56, 16  ;;  %v3040_v47 = vld [vmem:[%s2922_s13 + $0x44] sm:$0x1]  ;;  %s3527_s6 = smov (!%p241_p6, %s2163_s6), 31 }
  0x22   : > { %v357_v0 = vrot.slane %v355_v55, 5  ;;  %v2171_v3 = vcombine.low %v324_v57, %v334_v62  ;;  %v343_v9 = vrot.slane %v342_v58, 4  ;;  %v352_v11 = vor.u32 %v351_v63, %v347_v53  ;;  %s244_s8 = sadd.s32 %s2164_s7, %s3527_s6 }
  0x23   : > { %v362_v12 = vrot.slane %v360_v1, 4  ;;  %v373_v14 = vshrl.u32 %v2980_v56, 16  ;;  %v379_v17 = vshll.u32 %v2988_v60, 16  ;;  %v365_v20 = vrot.slane %v363_v4, 5  ;;  %s2165_s9 = sshll.u32 %s244_s8, 3 }
  0x24   : > { %2473 = vmatprep.mubr.msk.bf16.mxu0 %vm505_vm4, %v2171_v3  ;;  %2402 = vmatmul.mubr.msk.bf16.vlgmr.msra.gmra.mrb[0].mxu1 %vm505_vm4, %v2171_v3  ;;  %v348_v19 = vsel %vm2957_vm3, %v343_v9, %v347_v53  ;;  %v371_v21 = vrot.slane %v369_v10, 5  ;;  %v384_v23 = vshrl.u32 %v2996_v2, 16  ;;  %v353_v24 = vrot.slane %v352_v11, 4  ;;  %v3044_v53 = vld [vmem:[%s2922_s13 + $0x48] sm:$0xf]  ;;  %s3471_s14 = scalar_lea.vmem %s3509_s5, %s2165_s9 }
  0x25   : > { %v375_v25 = vrot.slane %v373_v14, 4  ;;  %v381_v26 = vrot.slane %v379_v17, 5  ;;  %v387_v27 = vshll.u32 %v2996_v2, 16  ;;  %2418 = vmatpush3.bf16.msra.mxu1 %v696_v61  ;;  %v366_v28 = vor.u32 %v365_v20, %v362_v12  ;;  %v3055_v61 = vld [vmem:[%s2922_s13 + $0x4c] sm:$0xf] }
  0x26   : > { %v386_v31 = vrot.slane %v384_v23, 4  ;;  %v393_v32 = vshll.u32 %v3008_v18, 16  ;;  %v397_v33 = vshrl.u32 %v3008_v18, 16  ;;  %2723 = vmatprep.subr.msk.bf16.mxu1 %vm530_vm0, %v3003_v5  ;;  %v358_v36 = vsel %vm2957_vm3, %v353_v24, %v357_v0  ;;  %v3063_v11 = vld [vmem:[%s2922_s13 + $0x50] sm:$0x1] }
  0x27   : > { %v376_v37 = vor.u32 %v375_v25, %v371_v21  ;;  %v389_v38 = vrot.slane %v387_v27, 5  ;;  %v403_v39 = vshll.u32 %v3015_v22, 16  ;;  %v3037_v43 = vcombine.low %v348_v19, %v358_v36  ;;  %v3066_v12 = vld [vmem:[%s2922_s13 + $0x54] sm:$0xf]  ;;  %v3075_v20 = vld [vmem:[%s2922_s13 + $0x58] sm:$0xf] }
  0x28   : > { %v367_v44 = vrot.slane %v366_v28, 4  ;;  %v395_v45 = vrot.slane %v393_v32, 5  ;;  %v399_v46 = vrot.slane %v397_v33, 4  ;;  %v408_v52 = vshrl.u32 %v3022_v35, 16 }
  0x29   : > { %v377_v48 = vrot.slane %v376_v37, 4  ;;  %v390_v49 = vor.u32 %v389_v38, %v386_v31  ;;  %v405_v50 = vrot.slane %v403_v39, 5  ;;  %2474 = vmatmul.mubr.msk.bf16.vlgmr.msra.gmra.mrb[0].mxu0 %vm505_vm4, %v3037_v43  ;;  %2405 = vmatprep.mubr.msk.bf16.mxu1 %vm505_vm4, %v3037_v43  ;;  %v411_v57 = vshll.u32 %v3022_v35, 16  ;;  %v3089_v38 = vld [vmem:[%s2922_s13 + $0x5c] sm:$0x1] }
  0x2a   : > { %v372_v54 = vsel %vm2957_vm3, %v367_v44, %v371_v21  ;;  %v400_v55 = vor.u32 %v399_v46, %v395_v45  ;;  %v417_v58 = vshll.u32 %v3030_v41, 16  ;;  %2490 = vmatpush3.bf16.msra.mxu0 %v1319_v59  ;;  %v410_v0 = vrot.slane %v408_v52, 4  ;;  %v3092_v39 = vld [vmem:[%s2922_s13 + $0x60] sm:$0xf] }
  0x2b   : > { %v382_v62 = vsel %vm2957_vm3, %v377_v48, %v381_v26  ;;  %v391_v63 = vrot.slane %v390_v49, 4  ;;  %v421_v1 = vshrl.u32 %v3030_v41, 16  ;;  %v413_v4 = vrot.slane %v411_v57, 5  ;;  %2727 = vmatprep.subr.msk.bf16.mxu0 %vm530_vm0, %v3035_v42  ;;  %v3100_v49 = vld [vmem:[%s2922_s13 + $0x64] sm:$0xf] }
  0x2c   : > { %v3060_v3 = vcombine.low %v372_v54, %v382_v62  ;;  %v401_v9 = vrot.slane %v400_v55, 4  ;;  %v419_v10 = vrot.slane %v417_v58, 5  ;;  %v427_v17 = vshll.u32 %v3040_v47, 16 }
  0x2d   : > { %v396_v59 = vsel %vm2957_vm3, %v391_v63, %v395_v45  ;;  %v423_v14 = vrot.slane %v421_v1, 4  ;;  %v432_v19 = vshrl.u32 %v3044_v53, 16  ;;  %v414_v23 = vor.u32 %v413_v4, %v410_v0 }
  0x2e   : > { %2477 = vmatprep.mubr.msk.bf16.mxu0 %vm505_vm4, %v3060_v3  ;;  %2406 = vmatmul.mubr.msk.bf16.gmra.mrb[4].mxu1 %vm505_vm4, %v3060_v3  ;;  %v406_v21 = vsel %vm2957_vm3, %v401_v9, %v405_v50  ;;  %v435_v24 = vshll.u32 %v3044_v53, 16  ;;  %v441_v25 = vshll.u32 %v3055_v61, 16  ;;  %v429_v28 = vrot.slane %v427_v17, 5 }
  0x2f   : > { %v3085_v26 = vcombine.low %v396_v59, %v406_v21  ;;  %v424_v27 = vor.u32 %v423_v14, %v419_v10  ;;  %v434_v31 = vrot.slane %v432_v19, 4  ;;  %v415_v32 = vrot.slane %v414_v23, 4  ;;  %v3121_v23 = vld [vmem:[%s2922_s13 + $0x68] sm:$0x1] }
  0x30   : > { %v437_v33 = vrot.slane %v435_v24, 5  ;;  %v443_v36 = vrot.slane %v441_v25, 5  ;;  %v445_v37 = vshrl.u32 %v3055_v61, 16  ;;  %v451_v45 = vshll.u32 %v3063_v11, 16 }
  0x31   : > { %2409 = vmatprep.mubr.msk.bf16.mxu1 %vm505_vm4, %v3085_v26  ;;  %v425_v44 = vrot.slane %v424_v27, 4  ;;  %v456_v46 = vshrl.u32 %v3066_v12, 16  ;;  %v459_v48 = vshll.u32 %v3066_v12, 16  ;;  %2478 = vmatmul.mubr.msk.bf16.gmra.mrb[4].mxu0 %vm505_vm4, %v3085_v26  ;;  %v420_v50 = vsel %vm2957_vm3, %v415_v32, %v419_v10 }
  0x32   : > { %v438_v52 = vor.u32 %v437_v33, %v434_v31  ;;  %v447_v54 = vrot.slane %v445_v37, 4  ;;  %v465_v55 = vshll.u32 %v3075_v20, 16  ;;  %v453_v58 = vrot.slane %v451_v45, 5 }
  0x33   : > { %v430_v57 = vsel %vm2957_vm3, %v425_v44, %v429_v28  ;;  %v458_v62 = vrot.slane %v456_v46, 4  ;;  %v461_v63 = vrot.slane %v459_v48, 5  ;;  %v469_v14 = vshrl.u32 %v3075_v20, 16 }
  0x34   : > { %v3109_v0 = vcombine.low %v420_v50, %v430_v57  ;;  %v439_v1 = vrot.slane %v438_v52, 4  ;;  %v448_v9 = vor.u32 %v447_v54, %v443_v36  ;;  %v467_v4 = vrot.slane %v465_v55, 5 }
  0x35   : > { %v462_v59 = vor.u32 %v461_v63, %v458_v62  ;;  %v475_v10 = vshll.u32 %v3089_v38, 16  ;;  %v1155_v17 = vshrl.u32 %v3092_v39, 16  ;;  %v1158_v24 = vshll.u32 %v3092_v39, 16 }
  0x36   : > { %2481 = vmatprep.mubr.msk.bf16.mxu0 %vm505_vm4, %v3109_v0  ;;  %2410 = vmatmul.mubr.msk.bf16.gmra.mrb[8].mxu1 %vm505_vm4, %v3109_v0  ;;  %v444_v19 = vsel %vm2957_vm3, %v439_v1, %v443_v36  ;;  %v449_v21 = vrot.slane %v448_v9, 4  ;;  %v1164_v25 = vshll.u32 %v3100_v49, 16  ;;  %v818_v27 = vrot.slane %v2945_v16, 5 }
  0x37   : > { %v463_v28 = vrot.slane %v462_v59, 4  ;;  %v471_v31 = vrot.slane %v469_v14, 4  ;;  %v1157_v32 = vrot.slane %v1155_v17, 4  ;;  %v1160_v37 = vrot.slane %v1158_v24, 5 }
  0x38   : > { %v454_v33 = vsel %vm2957_vm3, %v449_v21, %v453_v58  ;;  %v1166_v44 = vrot.slane %v1164_v25, 5  ;;  %v1168_v45 = vshrl.u32 %v3100_v49, 16  ;;  %v477_v48 = vrot.slane %v475_v10, 5 }
  0x39   : > { %v3129_v36 = vcombine.low %v444_v19, %v454_v33  ;;  %v472_v46 = vor.u32 %v471_v31, %v467_v4  ;;  %v1174_v50 = vshll.u32 %v3121_v23, 16  ;;  %v1161_v52 = vor.u32 %v1160_v37, %v1157_v32 }
  0x3a   : > { %v1170_v54 = vrot.slane %v1168_v45, 4  ;;  %v2203_v55 = vrot.slane %v2938_v13, 9  ;;  %v815_v57 = vrot.slane %v2942_v15, 5  ;;  %v822_v58 = vrot.slane %v2962_v34, 5 }
  0x3b   : > { %2482 = vmatmul.mubr.msk.bf16.gmra.mrb[8].mxu0 %vm505_vm4, %v3129_v36  ;;  %2413 = vmatprep.mubr.msk.bf16.mxu1 %vm505_vm4, %v3129_v36  ;;  %v468_v62 = vsel %vm2957_vm3, %v463_v28, %v467_v4  ;;  %v473_v63 = vrot.slane %v472_v46, 4  ;;  %v1162_v1 = vrot.slane %v1161_v52, 4  ;;  %v1176_v59 = vrot.slane %v1174_v50, 5 }
  0x3c   : > { %v1171_v9 = vor.u32 %v1170_v54, %v1166_v44  ;;  %v817_v14 = vrot.slane %v815_v57, 4  ;;  %v2186_v17 = vcombine.low %v2925_v6, %v2928_v7  ;;  %v816_v19 = vsel %vm3134_vm7, %v2203_v55, %v815_v57 }
  0x3d   : > { %v478_v10 = vsel %vm2957_vm3, %v473_v63, %v477_v48  ;;  %v1167_v24 = vsel %vm2957_vm3, %v1162_v1, %v1166_v44  ;;  %v825_v28 = vrot.slane %v2965_v40, 5  ;;  %v2204_v31 = vrot.slane %v2953_v29, 9 }
  0x3e   : > { %v3153_v21 = vcombine.low %v468_v62, %v478_v10  ;;  %v1172_v4 = vrot.slane %v1171_v9, 4  ;;  %v819_v25 = vsel %vm3134_vm7, %v817_v14, %v818_v27  ;;  %v824_v32 = vrot.slane %v822_v58, 4 }
  0x3f   : > { %v829_v33 = vrot.slane %v2980_v56, 5  ;;  %v3168_v44 = vcombine.low %v816_v19, %v819_v25  ;;  %v2205_v27 = vrot.slane %v2975_v51, 9  ;;  %v832_v46 = vrot.slane %v2988_v60, 5 }
  0x40   : > { %2485 = vmatprep.mubr.msk.bf16.mxu0 %vm505_vm4, %v3153_v21  ;;  %2414 = vmatmul.mubr.msk.bf16.gmra.mrb[12].mxu1 %vm505_vm4, %v3153_v21  ;;  %v1177_v37 = vsel %vm2957_vm3, %v1172_v4, %v1176_v59  ;;  %v836_v48 = vrot.slane %v3008_v18, 5  ;;  %v843_v50 = vrot.slane %v3030_v41, 5  ;;  %v3179_v52 = vcombine.low %v2938_v13, %v2942_v15 }
  0x41   : > { %v3171_v45 = vcombine.low %v1167_v24, %v1177_v37  ;;  %2419 = vmatprep.mubr.msk.bf16.mxu1 %vm505_vm4, %v2186_v17  ;;  %v831_v40 = vrot.slane %v829_v33, 4  ;;  %v823_v54 = vsel %vm3134_vm7, %v2204_v31, %v822_v58  ;;  %v826_v55 = vsel %vm3134_vm7, %v824_v32, %v825_v28  ;;  %v282_v31 = vld [vmem:[%s2922_s13 + $0x74] sm:$0x1]  ;;  %v3265_v37 = vld [vmem:[%s2922_s13 + $0x70] sm:$0xf] }
  0x42   : > { %v3189_v60 = vcombine.low %v2953_v29, %v2962_v34  ;;  %v830_v13 = vsel %vm3134_vm7, %v2205_v27, %v829_v33  ;;  %v2206_v15 = vrot.slane %v2996_v2, 9  ;;  %v838_v57 = vrot.slane %v836_v48, 4 }
  0x43   : > { %2486 = vmatmul.mubr.msk.bf16.gmra.mrb[12].mxu0 %vm505_vm4, %v3171_v45  ;;  %v839_v62 = vrot.slane %v3015_v22, 5  ;;  %v833_v58 = vsel %vm3134_vm7, %v831_v40, %v832_v46  ;;  %v2207_v63 = vrot.slane %v3022_v35, 9  ;;  %v845_v1 = vrot.slane %v843_v50, 4  ;;  %v3210_v22 = vld [vmem:[%s3505_s1 + $0xc] sm:$0xf] }
  0x44   : > { %2491 = vmatprep.mubr.msk.bf16.mxu0 %vm505_vm4, %v3168_v44  ;;  %v846_v29 = vrot.slane %v3040_v47, 5  ;;  %v913_v34 = vsel %vm530_vm0, %v3003_v5, 0  ;;  %v3203_v9 = vcombine.low %v823_v54, %v826_v55  ;;  %v1445_v59 = vsel %vm530_vm0, %v3035_v42, 0 }
  0x45   : > { %v3214_v14 = vcombine.low %v830_v13, %v833_v58  ;;  %v837_v47 = vsel %vm3134_vm7, %v2206_v15, %v836_v48  ;;  %v840_v5 = vsel %vm3134_vm7, %v838_v57, %v839_v62  ;;  %v850_v10 = vrot.slane %v3055_v61, 5 }
  0x46   : > { %v811_v42 = vrot.slane %v2931_v8, 5  ;;  %v3226_v17 = vcombine.low %v2975_v51, %v2980_v56  ;;  %v844_v19 = vsel %vm3134_vm7, %v2207_v63, %v843_v50  ;;  %v847_v24 = vsel %vm3134_vm7, %v845_v1, %v846_v29  ;;  %v3242_v56 = vld [vmem:[%s3505_s1 + $0x1c] sm:$0xf] }
  0x47   : > { %v3234_v4 = vcombine.low %v2996_v2, %v3008_v18  ;;  %v2208_v8 = vrot.slane %v3044_v53, 9  ;;  %v853_v25 = vrot.slane %v3063_v11, 5  ;;  %v2202_v51 = vrot.slane %v2925_v6, 9  ;;  %v3257_v11 = vld [vmem:[%s2922_s13 + $0x6c] sm:$0xf] }
  0x48   : > { %2420 = vmatmul.mubr.msk.bf16.vlgmr.msra.gmra.mrb[0].mxu1 %vm505_vm4, %v3179_v52  ;;  %v3248_v2 = vcombine.low %v837_v47, %v840_v5  ;;  %v2209_v18 = vrot.slane %v3066_v12, 9  ;;  %v808_v28 = vrot.slane %v2928_v7, 5  ;;  %v3254_v6 = vcombine.low %v3092_v39, %v3100_v49 }
  0x49   : > { %2423 = vmatprep.mubr.msk.bf16.mxu1 %vm505_vm4, %v3189_v60  ;;  %2436 = vmatpush3.bf16.msra.mxu1 %v913_v34  ;;  %v3262_v32 = vcombine.low %v844_v19, %v847_v24  ;;  %v852_v33 = vrot.slane %v850_v10, 4  ;;  %v1561_v27 = vshrl.u32 %v3257_v11, 16  ;;  %v1564_v7 = vshll.u32 %v3257_v11, 16 }
  0x4a   : > { %2724 = vmatprep.subr.msk.bf16.mxu1 %vm530_vm0, %v3210_v22  ;;  %v857_v40 = vrot.slane %v3075_v20, 5  ;;  %v809_v46 = vsel %vm3134_vm7, %v2202_v51, %v808_v28  ;;  %v810_v48 = vrot.slane %v808_v28, 4  ;;  %v1574_v50 = vshrl.u32 %v3265_v37, 16 }
  0x4b   : > { %2492 = vmatmul.mubr.msk.bf16.vlgmr.msra.gmra.mrb[0].mxu0 %vm505_vm4, %v3203_v9  ;;  %v1563_v54 = vrot.slane %v1561_v27, 4  ;;  %v1566_v55 = vrot.slane %v1564_v7, 5  ;;  %v1570_v13 = vshll.u32 %v3265_v37, 16  ;;  %v1580_v15 = vshll.u32 %v282_v31, 16 }
  0x4c   : > { %2508 = vmatpush3.bf16.msra.mxu0 %v1445_v59  ;;  %2495 = vmatprep.mubr.msk.bf16.mxu0 %vm505_vm4, %v3214_v14  ;;  %v812_v57 = vsel %vm3134_vm7, %v810_v48, %v811_v42  ;;  %v1576_v62 = vrot.slane %v1574_v50, 4  ;;  %v2278_v58 = vrot.slane %v3257_v11, 9  ;;  %v1711_v63 = vrot.slane %v3265_v37, 5 }
  0x4d   : > { %2728 = vmatprep.subr.msk.bf16.mxu0 %vm530_vm0, %v3242_v56  ;;  %v860_v1 = vrot.slane %v3089_v38, 5  ;;  %v2211_v29 = vcombine.low %v809_v46, %v812_v57  ;;  %v1567_v34 = vor.u32 %v1566_v55, %v1563_v54  ;;  %v1572_v59 = vrot.slane %v1570_v13, 5 }
  0x4e   : > { %v859_v47 = vrot.slane %v857_v40, 4  ;;  %v3287_v5 = vsel %vm3134_vm7, %v2278_v58, %v1711_v63  ;;  %v1713_v42 = vrot.slane %v1711_v63, 4  ;;  %v1714_v19 = vrot.slane %v282_v31, 5  ;;  %v3442_v63 = vld [vmem:[%s3506_s2] ss:$0 sm:$0xff] }
  0x4f   : > { %v1568_v24 = vrot.slane %v1567_v34, 4  ;;  %v1577_v51 = vor.u32 %v1576_v62, %v1572_v59  ;;  %v1582_v28 = vrot.slane %v1580_v15, 5  ;;  %v2191_v38 = vcombine.low %v3022_v35, %v3030_v41 }
  0x50   : > { %2424 = vmatmul.mubr.msk.bf16.gmra.mrb[4].mxu1 %vm505_vm4, %v3226_v17  ;;  %v851_v27 = vsel %vm3134_vm7, %v2208_v8, %v850_v10  ;;  %v1305_v7 = vrot.slane %v3100_v49, 5  ;;  %v3298_v46 = vsel %vm3134_vm7, %v1713_v42, %v1714_v19  ;;  %v854_v31 = vsel %vm3134_vm7, %v852_v33, %v853_v25 }
  0x51   : > { %2427 = vmatprep.mubr.msk.bf16.mxu1 %vm505_vm4, %v3234_v4  ;;  %v1573_v48 = vsel %vm2957_vm3, %v1568_v24, %v1572_v59  ;;  %v1578_v50 = vrot.slane %v1577_v51, 4  ;;  %v2280_v35 = vcombine.low %v3287_v5, %v3298_v46  ;;  %v2192_v41 = vcombine.low %v3044_v53, %v3055_v61 }
  0x52   : > { %v858_v49 = vsel %vm3134_vm7, %v2209_v18, %v857_v40  ;;  %v861_v10 = vsel %vm3134_vm7, %v859_v47, %v860_v1  ;;  %v2217_v25 = vcombine.low %v851_v27, %v854_v31  ;;  %v2247_v55 = vrot.slane %v3092_v39, 9 }
  0x53   : > { %2496 = vmatmul.mubr.msk.bf16.gmra.mrb[4].mxu0 %vm505_vm4, %v3248_v2  ;;  %v1583_v8 = vsel %vm2957_vm3, %v1578_v50, %v1582_v28  ;;  %v2218_v54 = vcombine.low %v858_v49, %v861_v10  ;;  %v1307_v13 = vrot.slane %v1305_v7, 4  ;;  %v1308_v15 = vrot.slane %v3121_v23, 5 }
  0x54   : > { %2499 = vmatprep.mubr.msk.bf16.mxu0 %vm505_vm4, %v3262_v32  ;;  %v2269_v33 = vcombine.low %v1573_v48, %v1583_v8  ;;  %v2193_v30 = vcombine.low %v3066_v12, %v3075_v20  ;;  %v1306_v53 = vsel %vm3134_vm7, %v2247_v55, %v1305_v7  ;;  %v1039_v39 = vsel %vm530_vm0, %v3210_v22, 0  ;;  %v2279_v20 = vld [vmem:[%s3505_s1 + $0x20] sm:$0xf] }
  0x55   : > { %v1309_v61 = vsel %vm3134_vm7, %v1307_v13, %v1308_v15  ;;  %v1593_v12 = vsel %vm530_vm0, %v3242_v56, 0  ;;  %v2259_v23 = vcombine.low %v3257_v11, %v3265_v37  ;;  %v1725_v16 = vsel %vm530_vm0, %v2279_v20, 0 }
  0x56   : > { %v2249_v18 = vcombine.low %v1306_v53, %v1309_v61 }
  0x58   : > { %2428 = vmatmul.mubr.msk.bf16.gmra.mrb[8].mxu1 %vm505_vm4, %v2191_v38 }
  0x59   : > { %2431 = vmatprep.mubr.msk.bf16.mxu1 %vm505_vm4, %v2192_v41 }
  0x5b   : > { %2500 = vmatmul.mubr.msk.bf16.gmra.mrb[8].mxu0 %vm505_vm4, %v2217_v25 }
  0x5c   : > { %2503 = vmatprep.mubr.msk.bf16.mxu0 %vm505_vm4, %v2218_v54 }
  0x60   : > { %2432 = vmatmul.mubr.msk.bf16.gmra.mrb[12].mxu1 %vm505_vm4, %v2193_v30 }
  0x61   : > { %2437 = vmatprep.mubr.msk.bf16.mxu1 %vm505_vm4, %v2211_v29 }
  0x63   : > { %2504 = vmatmul.mubr.msk.bf16.gmra.mrb[12].mxu0 %vm505_vm4, %v2249_v18 }
  0x64   : > { %2509 = vmatprep.mubr.msk.bf16.mxu0 %vm505_vm4, %v3189_v60 }
  0x68   : > { %2438 = vmatmul.mubr.msk.bf16.vlgmr.msra.gmra.mrb[0].mxu1 %vm505_vm4, %v3168_v44  ;;  %v2787_v44 = vld [vmem:[%s3507_s3 + $0x30] sm:$0xff]  }
  0x69   : > { %2441 = vmatprep.mubr.msk.bf16.mxu1 %vm505_vm4, %v3203_v9  ;;  %2454 = vmatpush3.bf16.msra.mxu1 %v1039_v39 }
  0x6b   : > { %2510 = vmatmul.mubr.msk.bf16.vlgmr.msra.gmra.mrb[0].mxu0 %vm505_vm4, %v3226_v17 }
  0x6c   : > { %2526 = vmatpush3.bf16.msra.mxu0 %v1593_v12  ;;  %2513 = vmatprep.mubr.msk.bf16.mxu0 %vm505_vm4, %v3234_v4 }
  0x6d   : > { %2729 = vmatprep.subr.msk.bf16.mxu0 %vm530_vm0, %v2279_v20 }
  0x70   : > { %2442 = vmatmul.mubr.msk.bf16.gmra.mrb[4].mxu1 %vm505_vm4, %v3214_v14 }
  0x71   : > { %2445 = vmatprep.mubr.msk.bf16.mxu1 %vm505_vm4, %v3248_v2 }
  0x73   : > { %2514 = vmatmul.mubr.msk.bf16.gmra.mrb[4].mxu0 %vm505_vm4, %v2191_v38 }
  0x74   : > { %2517 = vmatprep.mubr.msk.bf16.mxu0 %vm505_vm4, %v2192_v41 }
  0x78   : > { %2446 = vmatmul.mubr.msk.bf16.gmra.mrb[8].mxu1 %vm505_vm4, %v3262_v32 }
  0x79   : > { %2449 = vmatprep.mubr.msk.bf16.mxu1 %vm505_vm4, %v2217_v25 }
  0x7b   : > { %2518 = vmatmul.mubr.msk.bf16.gmra.mrb[8].mxu0 %vm505_vm4, %v2193_v30 }
  0x7c   : > { %2521 = vmatprep.mubr.msk.bf16.mxu0 %vm505_vm4, %v3254_v6 }
  0x80   : > { %2450 = vmatmul.mubr.msk.bf16.gmra.mrb[12].mxu1 %vm505_vm4, %v2218_v54 }
  0x81   : > { %2455 = vmatprep.mubr.msk.bf16.mxu1 %vm505_vm4, %v3179_v52 }
  0x83   : > { %2522 = vmatmul.mubr.msk.bf16.gmra.mrb[12].mxu0 %vm505_vm4, %v2259_v23 }
  0x84   : > { %2527 = vmatprep.mubr.msk.bf16.mxu0 %vm505_vm4, %v3037_v43  ;;  %v2781_v43 = vld [vmem:[%s3507_s3] sm:$0xff]  }
  0x85   : > { %2561 = vmatprep.subr.bf16.mxu1 %v2781_v43 }
  0x88   : > { %2456 = vmatmul.mubr.msk.bf16.vlgmr.msra.gmra.mrb[0].mxu1 %vm505_vm4, %v3189_v60 }
  0x89   : > { %2459 = vmatprep.mubr.msk.bf16.mxu1 %vm505_vm4, %v3226_v17  ;;  %2562 = vmatpush3.bf16.msra.mxu1 %v2781_v43 }
  0x8b   : > { %2528 = vmatmul.mubr.msk.bf16.vlgmr.msra.gmra.mrb[0].mxu0 %vm505_vm4, %v3060_v3  ;;  %v2782_v3 = vld [vmem:[%s3507_s3 + $0x8] sm:$0xff]  }
  0x8c   : > { %2544 = vmatpush3.bf16.msra.mxu0 %v1725_v16  ;;  %2531 = vmatprep.mubr.msk.bf16.mxu0 %vm505_vm4, %v3085_v26  ;;  %v2783_v26 = vld [vmem:[%s3507_s3 + $0x10] sm:$0xff]  }
  0x8d   : > { %2563 = vmatprep.subr.bf16.mxu1 %v2782_v3 }
  0x8e   : > { %2564 = vmatpush3.bf16.msra.mxu1 %v2782_v3 }
  0x8f   : > { %2565 = vmatprep.subr.bf16.mxu1 %v2783_v26 }
  0x90   : > { %2460 = vmatmul.mubr.msk.bf16.gmra.mrb[4].mxu1 %vm505_vm4, %v3234_v4 }
  0x91   : > { %2463 = vmatprep.mubr.msk.bf16.mxu1 %vm505_vm4, %v2191_v38 }
  0x92   : > { %2566 = vmatpush3.bf16.msra.mxu1 %v2783_v26 }
  0x93   : > { %2532 = vmatmul.mubr.msk.bf16.gmra.mrb[4].mxu0 %vm505_vm4, %v3109_v0  ;;  %v2784_v0 = vld [vmem:[%s3507_s3 + $0x18] sm:$0xff]  }
  0x94   : > { %2535 = vmatprep.mubr.msk.bf16.mxu0 %vm505_vm4, %v3129_v36  ;;  %2567 = vmatprep.subr.bf16.mxu1 %v2784_v0  ;;  %v2785_v36 = vld [vmem:[%s3507_s3 + $0x20] sm:$0xff]  }
  0x96   : > { %2568 = vmatpush3.bf16.msra.mxu1 %v2784_v0 }
  0x97   : > { %2569 = vmatprep.subr.bf16.mxu1 %v2785_v36 }
  0x98   : > { %2464 = vmatmul.mubr.msk.bf16.gmra.mrb[8].mxu1 %vm505_vm4, %v2192_v41 }
  0x99   : > { %2467 = vmatprep.mubr.msk.bf16.mxu1 %vm505_vm4, %v2193_v30 }
  0x9a   : > { %2570 = vmatpush3.bf16.msra.mxu1 %v2785_v36 }
  0x9b   : > { %2536 = vmatmul.mubr.msk.bf16.gmra.mrb[8].mxu0 %vm505_vm4, %v3153_v21  ;;  %v2786_v21 = vld [vmem:[%s3507_s3 + $0x28] sm:$0xff]  }
  0x9c   : > { %2539 = vmatprep.mubr.msk.bf16.mxu0 %vm505_vm4, %v3171_v45  ;;  %2571 = vmatprep.subr.bf16.mxu1 %v2786_v21  ;;  %v2788_v45 = vld [vmem:[%s3507_s3 + $0x38] sm:$0xff]  }
  0x9e   : > { %2572 = vmatpush3.bf16.msra.mxu1 %v2786_v21 }
  0x9f   : > { %2573 = vmatprep.subr.bf16.mxu1 %v2787_v44 }
  0xa0   : > { %2468 = vmatmul.mubr.msk.bf16.gmra.mrb[12].mxu1 %vm505_vm4, %v3254_v6 }
  0xa2   : > { %2574 = vmatpush3.bf16.msra.mxu1 %v2787_v44 }
  0xa3   : > { %2540 = vmatmul.mubr.msk.bf16.gmra.mrb[12].mxu0 %vm505_vm4, %v2269_v33  ;;  %2575 = vmatprep.subr.bf16.mxu1 %v2788_v45 }
  0xa4   : > { %2545 = vmatprep.mubr.msk.bf16.mxu0 %vm505_vm4, %v3203_v9 }
  0xa6   : > { %2576 = vmatpush3.bf16.msra.mxu1 %v2788_v45 }
  0xab   : > { %2546 = vmatmul.mubr.msk.bf16.vlgmr.msra.gmra.mrb[0].mxu0 %vm505_vm4, %v3214_v14 }
  0xac   : > { %2549 = vmatprep.mubr.msk.bf16.mxu0 %vm505_vm4, %v3248_v2 }
  0xb3   : > { %2550 = vmatmul.mubr.msk.bf16.gmra.mrb[4].mxu0 %vm505_vm4, %v3262_v32 }
  0xb4   : > { %2553 = vmatprep.mubr.msk.bf16.mxu0 %vm505_vm4, %v2217_v25 }
  0xbb   : > { %2554 = vmatmul.mubr.msk.bf16.gmra.mrb[8].mxu0 %vm505_vm4, %v2218_v54 }
  0xbc   : > { %2557 = vmatprep.mubr.msk.bf16.mxu0 %vm505_vm4, %v2249_v18 }
  0xc3   : > { %2558 = vmatmul.mubr.msk.bf16.gmra.mrb[12].mxu0 %vm505_vm4, %v2280_v35 }
 0x15b   : > { %v2457_v52 = vpop.f32.mrb[0].mxu1 }
 0x15c   : > { %v1075_v60 = vpop.f32.mrb[1].mxu1 }
 0x15d   : > { %v2458_v9 = vpop.f32.mrb[2].mxu1 }
 0x15e   : > { %v1078_v22 = vpop.f32.mrb[3].mxu1 }
 0x163   : > { %v2461_v14 = vpop.f32.mrb[4].mxu1 }
 0x164   : > { %v1091_v17 = vpop.f32.mrb[5].mxu1 }
 0x165   : > { %v2462_v4 = vpop.f32.mrb[6].mxu1 }
 0x166   : > { %v1094_v56 = vpop.f32.mrb[7].mxu1 }
 0x16b   : > { %v2465_v2 = vpop.f32.mrb[8].mxu1 }
 0x16c   : > { %v1107_v6 = vpop.f32.mrb[9].mxu1 }
 0x16d   : > { %v2466_v11 = vpop.f32.mrb[10].mxu1 }
 0x16e   : > { %v1110_v32 = vpop.f32.mrb[11].mxu1 }
 0x173   : > { %v2469_v37 = vpop.f32.mrb[12].mxu1 }
 0x174   : > { %v3433_v40 = vpop.f32.mrb[13].mxu1 }
 0x175   : > { %v3435_v57 = vpop.f32.mrb[14].mxu1 }
 0x176   : > { %v3437_v62 = vpop.f32.mrb[15].mxu1 }
 0x17e   : > { %v2547_v58 = vpop.f32.mrb[0].mxu0 }
 0x17f   : > { %v2593_v1 = vadd.f32 %v2547_v58, %v2457_v52  ;;  %v1761_v29 = vpop.f32.mrb[1].mxu0 }
 0x180   : > { %v2594_v34 = vadd.f32 %v1761_v29, %v1075_v60  ;;  %v2548_v59 = vpop.f32.mrb[2].mxu0 }
 0x181   : > { %v1849_v47 = vadd.f32 %v2593_v1, %v3442_v63  ;;  %v2595_v5 = vadd.f32 %v2548_v59, %v2458_v9  ;;  %v1764_v42 = vpop.f32.mrb[3].mxu0 }
 0x182   : > { %v1847_v19 = vadd.f32 %v2594_v34, %v3442_v63  ;;  %v2596_v24 = vadd.f32 %v1764_v42, %v1078_v22 }
 0x183   : > { %v1850_v51 = vadd.f32 %v2595_v5, %v3442_v63  ;;  %v1865_v38 = vmax.f32 %v1849_v47, 0.0 }
 0x184   : > { %v1848_v28 = vadd.f32 %v2596_v24, %v3442_v63  ;;  %v1863_v7 = vmax.f32 %v1847_v19, 0.0 }
 0x185   : > { %v1866_v27 = vmax.f32 %v1850_v51, 0.0 }
 0x186   : > { %v1864_v46 = vmax.f32 %v1848_v28, 0.0  ;;  %v2551_v31 = vpop.f32.mrb[4].mxu0 }
 0x187   : > { %v1880_v48 = vpack.c.bf16 %v1866_v27, %v1865_v38  ;;  %v2597_v50 = vadd.f32 %v2551_v31, %v2461_v14  ;;  %v1777_v35 = vpop.f32.mrb[5].mxu0 }
 0x188   : > { %v2598_v41 = vadd.f32 %v1777_v35, %v1091_v17  ;;  %v2552_v49 = vpop.f32.mrb[6].mxu0  ;;  %v1879_v10 = vpack.c.bf16 %v1864_v46, %v1863_v7 }
 0x189   : > { %v1853_v8 = vadd.f32 %v2597_v50, %v3442_v63  ;;  %v2599_v25 = vadd.f32 %v2552_v49, %v2462_v4  ;;  %v1780_v33 = vpop.f32.mrb[7].mxu0 }
 0x18a   : > { %v1851_v54 = vadd.f32 %v2598_v41, %v3442_v63  ;;  %v2600_v55 = vadd.f32 %v1780_v33, %v1094_v56  ;;  %2577 = vmatprep.mubr.bf16.mxu1 %v1879_v10 }
 0x18b   : > { %v1854_v13 = vadd.f32 %v2599_v25, %v3442_v63  ;;  %2578 = vmatmul.mubr.bf16.vlgmr.msra.gmra.mrb[16].mxu1 %v1880_v48  ;;  %v1869_v30 = vmax.f32 %v1853_v8, 0.0 }
 0x18c   : > { %v1852_v15 = vadd.f32 %v2600_v55, %v3442_v63  ;;  %v1867_v61 = vmax.f32 %v1851_v54, 0.0 }
 0x18d   : > { %v1870_v53 = vmax.f32 %v1854_v13, 0.0 }
 0x18e   : > { %v1868_v18 = vmax.f32 %v1852_v15, 0.0  ;;  %v2555_v39 = vpop.f32.mrb[8].mxu0 }
 0x18f   : > { %v2601_v12 = vadd.f32 %v2555_v39, %v2465_v2  ;;  %v1793_v20 = vpop.f32.mrb[9].mxu0  ;;  %v1882_v23 = vpack.c.bf16 %v1870_v53, %v1869_v30 }
 0x190   : > { %v2602_v16 = vadd.f32 %v1793_v20, %v1107_v6  ;;  %v2556_v43 = vpop.f32.mrb[10].mxu0  ;;  %v1881_v3 = vpack.c.bf16 %v1868_v18, %v1867_v61 }
 0x191   : > { %v1857_v26 = vadd.f32 %v2601_v12, %v3442_v63  ;;  %v2603_v0 = vadd.f32 %v2556_v43, %v2466_v11  ;;  %v1796_v36 = vpop.f32.mrb[11].mxu0 }
 0x192   : > { %v1855_v21 = vadd.f32 %v2602_v16, %v3442_v63  ;;  %v2604_v44 = vadd.f32 %v1796_v36, %v1110_v32  ;;  %2581 = vmatprep.mubr.bf16.mxu1 %v1881_v3 }
 0x193   : > { %v1858_v45 = vadd.f32 %v2603_v0, %v3442_v63  ;;  %2582 = vmatmul.mubr.bf16.gmra.mrb[20].mxu1 %v1882_v23  ;;  %v1873_v60 = vmax.f32 %v1857_v26, 0.0 }
 0x194   : > { %v1856_v52 = vadd.f32 %v2604_v44, %v3442_v63  ;;  %v1871_v22 = vmax.f32 %v1855_v21, 0.0 }
 0x195   : > { %v1874_v9 = vmax.f32 %v1858_v45, 0.0 }
 0x196   : > { %v1872_v14 = vmax.f32 %v1856_v52, 0.0  ;;  %v2559_v17 = vpop.f32.mrb[12].mxu0 }
 0x197   : > { %v2605_v4 = vadd.f32 %v2559_v17, %v2469_v37  ;;  %v1809_v56 = vpop.f32.mrb[13].mxu0  ;;  %v1884_v2 = vpack.c.bf16 %v1874_v9, %v1873_v60 }
 0x198   : > { %v2606_v6 = vadd.f32 %v1809_v56, %v3433_v40  ;;  %v2560_v11 = vpop.f32.mrb[14].mxu0  ;;  %v1883_v58 = vpack.c.bf16 %v1872_v14, %v1871_v22 }
 0x199   : > { %v1861_v32 = vadd.f32 %v2605_v4, %v3442_v63  ;;  %v2607_v1 = vadd.f32 %v2560_v11, %v3435_v57  ;;  %v1812_v29 = vpop.f32.mrb[15].mxu0  ;;  %v2290_v57 = vld [vmem:[%s3508_s4] ss:$0 sm:$0xff] }
 0x19a   : > { %v1859_v34 = vadd.f32 %v2606_v6, %v3442_v63  ;;  %v2608_v59 = vadd.f32 %v1812_v29, %v3437_v62  ;;  %2585 = vmatprep.mubr.bf16.mxu1 %v1883_v58 }
 0x19b   : > { %v1862_v37 = vadd.f32 %v2607_v1, %v3442_v63  ;;  %2586 = vmatmul.mubr.bf16.gmra.mrb[24].mxu1 %v1884_v2  ;;  %v1877_v40 = vmax.f32 %v1861_v32, 0.0 }
 0x19c   : > { %v1860_v47 = vadd.f32 %v2608_v59, %v3442_v63  ;;  %v1875_v42 = vmax.f32 %v1859_v34, 0.0 }
 0x19d   : > { %v1878_v5 = vmax.f32 %v1862_v37, 0.0 }
 0x19e   : > { %v1876_v19 = vmax.f32 %v1860_v47, 0.0 }
 0x19f   : > { %v1886_v24 = vpack.c.bf16 %v1878_v5, %v1877_v40 }
 0x1a0   : > { %v1885_v51 = vpack.c.bf16 %v1876_v19, %v1875_v42 }
 0x1a2   : > { %2589 = vmatprep.mubr.bf16.mxu1 %v1885_v51 }
 0x1a3   : > { %2590 = vmatmul.mubr.bf16.gmra.mrb[28].mxu1 %v1886_v24 }
 0x25e   : > { %v2579_v62 = vpop.f32.mrb[16].mxu1 }
 0x25f   : > { %v2001_v63 = vadd.f32 %v2579_v62, %v2290_v57  ;;  %v1992_v28 = vpop.f32.mrb[17].mxu1 }
 0x260   : > { %v1993_v38 = vadd.f32 %v2290_v57, %v1992_v28  ;;  %v2580_v27 = vpop.f32.mrb[18].mxu1 }
 0x261   : > { %2057 = vst [vmem:[%s3471_s14 + $0x10] sm:$0xff] %v2001_v63  ;;  %v2004_v7 = vadd.f32 %v2580_v27, %v2290_v57  ;;  %v1995_v46 = vpop.f32.mrb[19].mxu1 }
 0x262   : > { %2055 = vst [vmem:[%s3471_s14] sm:$0xff] %v1993_v38  ;;  %v1996_v31 = vadd.f32 %v2290_v57, %v1995_v46 }
 0x263   : > { %2058 = vst [vmem:[%s3471_s14 + $0x18] sm:$0xff] %v2004_v7 }
 0x264   : > { %2056 = vst [vmem:[%s3471_s14 + $0x8] sm:$0xff] %v1996_v31 }
 0x266   : > { %v2583_v48 = vpop.f32.mrb[20].mxu1 }
 0x267   : > { %v2017_v50 = vadd.f32 %v2583_v48, %v2290_v57  ;;  %v2008_v35 = vpop.f32.mrb[21].mxu1 }
 0x268   : > { %v2009_v41 = vadd.f32 %v2290_v57, %v2008_v35  ;;  %v2584_v49 = vpop.f32.mrb[22].mxu1 }
 0x269   : > { %2061 = vst [vmem:[%s3471_s14 + $0x30] sm:$0xff] %v2017_v50  ;;  %v2020_v10 = vadd.f32 %v2584_v49, %v2290_v57  ;;  %v2011_v8 = vpop.f32.mrb[23].mxu1 }
 0x26a   : > { %2059 = vst [vmem:[%s3471_s14 + $0x20] sm:$0xff] %v2009_v41  ;;  %v2012_v25 = vadd.f32 %v2290_v57, %v2011_v8 }
 0x26b   : > { %2062 = vst [vmem:[%s3471_s14 + $0x38] sm:$0xff] %v2020_v10 }
 0x26c   : > { %2060 = vst [vmem:[%s3471_s14 + $0x28] sm:$0xff] %v2012_v25 }
 0x26e   : > { %v2587_v33 = vpop.f32.mrb[24].mxu1 }
 0x26f   : > { %v2033_v54 = vadd.f32 %v2587_v33, %v2290_v57  ;;  %v2024_v55 = vpop.f32.mrb[25].mxu1 }
 0x270   : > { %v2025_v13 = vadd.f32 %v2290_v57, %v2024_v55  ;;  %v2588_v15 = vpop.f32.mrb[26].mxu1 }
 0x271   : > { %2065 = vst [vmem:[%s3471_s14 + $0x50] sm:$0xff] %v2033_v54  ;;  %v2036_v30 = vadd.f32 %v2588_v15, %v2290_v57  ;;  %v2027_v53 = vpop.f32.mrb[27].mxu1 }
 0x272   : > { %2063 = vst [vmem:[%s3471_s14 + $0x40] sm:$0xff] %v2025_v13  ;;  %v2028_v61 = vadd.f32 %v2290_v57, %v2027_v53 }
 0x273   : > { %2066 = vst [vmem:[%s3471_s14 + $0x58] sm:$0xff] %v2036_v30 }
 0x274   : > { %2064 = vst [vmem:[%s3471_s14 + $0x48] sm:$0xff] %v2028_v61 }
 0x276   : > { %v2591_v18 = vpop.f32.mrb[28].mxu1 }
 0x277   : > { %v2049_v39 = vadd.f32 %v2591_v18, %v2290_v57  ;;  %v2040_v12 = vpop.f32.mrb[29].mxu1 }
 0x278   : > { %v2041_v20 = vadd.f32 %v2290_v57, %v2040_v12  ;;  %v2592_v23 = vpop.f32.mrb[30].mxu1 }
 0x279   : > { %2069 = vst [vmem:[%s3471_s14 + $0x70] sm:$0xff] %v2049_v39  ;;  %v2052_v16 = vadd.f32 %v2592_v23, %v2290_v57  ;;  %v2043_v43 = vpop.f32.mrb[31].mxu1 }
 0x27a   : > { %2067 = vst [vmem:[%s3471_s14 + $0x60] sm:$0xff] %v2041_v20  ;;  %v2044_v3 = vadd.f32 %v2290_v57, %v2043_v43 }
 0x27b   : > { %2070 = vst [vmem:[%s3471_s14 + $0x78] sm:$0xff] %v2052_v16 }
 0x27c   : > { %2068 = vst [vmem:[%s3471_s14 + $0x68] sm:$0xff] %v2044_v3 }
 0x27d PF: > { %s15_s22 = sadd.s32 1, %s2827_s22   ;;  %s3514_s18 = smov %s2819_s20 }
 0x27e   : > { %p12_p7 = scmp.ge.s32.totalorder %s15_s22, 6   ;;  %s3515_s19 = smov %s2823_s21 }
 0x27f   : > { %s3516_s20 = smov %s3519_s23  ;;  %s3517_s21 = smov %s3523_s24 }
 0x280   :  { %14 = sbr.rel (!%p12_p7) target bundleno = 3 (0x3), region = 79 }

</bundles_post_ra>
